<compile_context>
chip_gen: v7x
topology: tpu7x:2x2x1
jax: 0.10.0
libtpu: 0.0.40
codegen_flags: <defaults>
</compile_context>

<pallas_src>
import functools

import jax
import jax.numpy as jnp
from jax.experimental import pallas as pl
from jax.experimental.pallas import tpu as pltpu

_LANE = 128
_SUBLANE = 8
_MAX_BLOCK_ROWS = 2048          # (2048, 128) f32 block = 1 MiB per pipeline buffer
_NUM_CORES = 2                  # v7x has 2 TCs; extra grid axis is harmless on v5e/v6e
_PALLAS_MIN_ELEMENTS = 1 << 16  # below this, fused XLA beats a kernel launch


def _round_up(x, m):
    return -(-x // m) * m


def _loss_fun_kernel(o_ref, t_ref, loss_ref, loss1_ref, *, num_classes):
    """One (TR, 128) block of the flattened (N*C,) problem.

    Flat element f = n*C + c sits at lane (f % 128); since C divides 128 the
    class id is (lane % C) and the C lanes of one batch element never straddle
    a row, so all class logic is expressible with lane masks.
    """
    # Per-core accumulator init on the first step of the reduction axis.
    @pl.when(pl.program_id(1) == 0)
    def _():
        loss_ref[...] = jnp.zeros_like(loss_ref)
        loss1_ref[...] = jnp.zeros_like(loss1_ref)

    o = o_ref[...].astype(jnp.float32)          # (TR, 128), native dtype upcast
    t = t_ref[...].astype(jnp.float32)

    # BCELoss(reduction='none') with PyTorch's log clamp at -100.
    # NOTE: the clamp MUST stay before the t / (1 - t) multiplies: padded
    # elements carry (o=1, t=1) and rely on max(log(0), -100) so that the
    # 0 * log(0) term becomes 0 * (-100) == 0 instead of 0 * (-inf) == NaN.
    log_o = jnp.maximum(jnp.log(o), -100.0)
    log_1mo = jnp.maximum(jnp.log(1.0 - o), -100.0)
    ce = -(t * log_o + (1.0 - t) * log_1mo)     # (TR, 128)

    lanes = jax.lax.broadcasted_iota(jnp.int32, o.shape, 1)
    gi = jax.lax.broadcasted_iota(jnp.int32, (o.shape[1], o.shape[1]), 0)
    gj = jax.lax.broadcasted_iota(jnp.int32, (o.shape[1], o.shape[1]), 1)
    if num_classes & (num_classes - 1) == 0:    # power of two: pure bit ops
        shift = num_classes.bit_length() - 1
        is_c0 = (lanes & (num_classes - 1)) == 0
        same_group = (gi >> shift) == (gj >> shift)
    else:
        is_c0 = (lanes % num_classes) == 0
        same_group = (gi // num_classes) == (gj // num_classes)

    # w1[n] = any(target[n, 1:] > 0), broadcast to every lane of n's group.
    # One small MXU matmul against the lane-group membership matrix replaces
    # cross-lane rolls / reshapes; operands (0/1) are exact in bf16 and the
    # accumulation is f32.
    tail_hit = jnp.where(is_c0, 0.0, (t > 0.0).astype(jnp.float32))
    gmat = same_group.astype(jnp.bfloat16)                        # (128, 128)
    spread = jnp.dot(tail_hit.astype(jnp.bfloat16), gmat,
                     preferred_element_type=jnp.float32)          # (TR, 128)
    w1 = (spread > 0.0).astype(jnp.float32)

    # loss[:, 0] = 5*ce[:, 0];  loss[:, 1:] = w1*ce[:, 1:];  loss1 = ce[:, 0].
    weight = jnp.where(is_c0, 5.0, w1)
    loss_rows = jnp.sum(weight * ce, axis=0, keepdims=True)           # (1, 128)
    loss1_rows = jnp.sum(jnp.where(is_c0, ce, 0.0), axis=0, keepdims=True)

    # Lane-wide partial accumulation; the cross-lane reduce happens once in
    # the wrapper instead of every grid step.
    loss_ref[...] = loss_ref[...] + loss_rows.reshape(1, 1, _LANE)
    loss1_ref[...] = loss1_ref[...] + loss1_rows.reshape(1, 1, _LANE)


def _loss_fun_ref(output, target):
    """Pure-JAX reference (also the small-N fast path)."""
    o = output.astype(jnp.float32)
    t = target.astype(jnp.float32)
    ce = -(t * jnp.maximum(jnp.log(o), -100.0)
           + (1.0 - t) * jnp.maximum(jnp.log(1.0 - o), -100.0))
    loss1 = ce.at[:, 1:].set(0.0)
    w1 = (jnp.any(t[:, 1:] > 0.0, axis=1, keepdims=True)).astype(jnp.float32)
    loss = (1.0 - w1) * loss1 + w1 * ce
    loss = loss.at[:, 0].multiply(5.0)
    return jnp.mean(loss), jnp.mean(loss1)


def loss_fun(output, target, *, use_pallas=None):
    """Returns (mean(loss), mean(loss1)) as float32 scalars (module semantics)."""
    assert output.shape == target.shape and output.ndim == 2
    n, c = output.shape
    total = n * c

    if use_pallas is None:
        use_pallas = total >= _PALLAS_MIN_ELEMENTS
    if (not use_pallas) or c < 2 or (_LANE % c != 0):
        return _loss_fun_ref(output, target)

    # Flatten row-major: element (n, c) -> flat index n*C + c.  Only a reshape
    # plus a tiny pad; no transpose copy, no dtype-cast copy.
    o_flat = jnp.reshape(output, (-1,))
    t_flat = jnp.reshape(target, (-1,))

    # Balanced tiles: rows multiple of 8, equal tiles per core, padding bounded
    # by ~one (8, 128) group per tile (never a whole max-size tile).
    rows_min = _round_up(pl.cdiv(total, _LANE), _SUBLANE)
    n_tiles = _round_up(pl.cdiv(rows_min, _MAX_BLOCK_ROWS), _NUM_CORES)
    tr = _round_up(pl.cdiv(rows_min, n_tiles), _SUBLANE)
    rows = tr * n_tiles
    padded_total = rows * _LANE
    pad = padded_total - total
    if pad:
        # (o=1, t=1) pads contribute exactly 0 to every sum (see the clamp note
        # in the kernel) and never share a lane-group with real batch elements.
        o_flat = jnp.pad(o_flat, (0, pad), constant_values=1)
        t_flat = jnp.pad(t_flat, (0, pad), constant_values=1)
    o2 = jnp.reshape(o_flat, (rows, _LANE))
    t2 = jnp.reshape(t_flat, (rows, _LANE))

    tiles_per_core = n_tiles // _NUM_CORES
    itemsize = o2.dtype.itemsize + t2.dtype.itemsize

    loss_parts, loss1_parts = pl.pallas_call(
        functools.partial(_loss_fun_kernel, num_classes=c),
        out_shape=(
            jax.ShapeDtypeStruct((_NUM_CORES, 1, _LANE), jnp.float32),
            jax.ShapeDtypeStruct((_NUM_CORES, 1, _LANE), jnp.float32),
        ),
        grid=(_NUM_CORES, tiles_per_core),
        in_specs=[
            pl.BlockSpec((tr, _LANE), lambda p, i: (p * tiles_per_core + i, 0)),
            pl.BlockSpec((tr, _LANE), lambda p, i: (p * tiles_per_core + i, 0)),
        ],
        out_specs=(
            pl.BlockSpec((1, 1, _LANE), lambda p, i: (p, 0, 0)),
            pl.BlockSpec((1, 1, _LANE), lambda p, i: (p, 0, 0)),
        ),
        compiler_params=pltpu.CompilerParams(
            dimension_semantics=("parallel", "arbitrary"),
        ),
        cost_estimate=pl.CostEstimate(
            flops=int((12 + 2 * _LANE) * padded_total),
            transcendentals=int(2 * padded_total),
            bytes_accessed=int(padded_total * itemsize + 2 * _NUM_CORES * _LANE * 4),
        ),
    )(o2, t2)

    denom = jnp.float32(total)  # true (unpadded) N*C for the means
    mean_loss = jnp.sum(loss_parts) / denom
    mean_loss1 = jnp.sum(loss1_parts) / denom
    return mean_loss, mean_loss1


if __name__ == "__main__":
    key = jax.random.PRNGKey(0)
    k1, k2 = jax.random.split(key)
    N, C = 8, 4  # small batch, 4-class multi-label head

    # output: probabilities in (0, 1); target: multi-hot {0, 1}
    output = jax.nn.sigmoid(jax.random.normal(k1, (N, C), dtype=jnp.float32))
    target = (jax.random.uniform(k2, (N, C)) > 0.5).astype(jnp.float32)

    # Force the Pallas path even at this tiny size so the kernel is exercised.
    mean_loss, mean_loss1 = loss_fun(output, target, use_pallas=True)
    jax.block_until_ready((mean_loss, mean_loss1))
    ref_loss, ref_loss1 = _loss_fun_ref(output, target)
    assert jnp.allclose(mean_loss, ref_loss, rtol=1e-5, atol=1e-5), (mean_loss, ref_loss)
    assert jnp.allclose(mean_loss1, ref_loss1, rtol=1e-5, atol=1e-5), (mean_loss1, ref_loss1)

    # Ragged size: exercises padding to a lane-group boundary + multi-core grid.
    N2 = 300
    o_big = jax.nn.sigmoid(jax.random.normal(k1, (N2, C), dtype=jnp.float32))
    t_big = (jax.random.uniform(k2, (N2, C)) > 0.8).astype(jnp.float32)
    l_big, l1_big = loss_fun(o_big, t_big, use_pallas=True)
    jax.block_until_ready((l_big, l1_big))
    rl_big, rl1_big = _loss_fun_ref(o_big, t_big)
    assert jnp.allclose(l_big, rl_big, rtol=1e-5, atol=1e-5), (l_big, rl_big)
    assert jnp.allclose(l1_big, rl1_big, rtol=1e-5, atol=1e-5), (l1_big, rl1_big)

    # Auto mode (small-N fast path) must agree as well.
    a_loss, a_loss1 = loss_fun(output, target)
    assert jnp.allclose(a_loss, ref_loss, rtol=1e-6, atol=1e-6)
    assert jnp.allclose(a_loss1, ref_loss1, rtol=1e-6, atol=1e-6)

    print("KERNEL_OK")
</pallas_src>

<mosaic_0001>
module attributes {stable_mosaic.version = 11 : i64} {
  func.func @_loss_fun_kernel(%arg0: i32, %arg1: i32, %arg2: memref<8x128xf32, #tpu.memory_space<vmem>>, %arg3: memref<8x128xf32, #tpu.memory_space<vmem>>, %arg4: memref<1x1x128xf32, #tpu.memory_space<vmem>>, %arg5: memref<1x1x128xf32, #tpu.memory_space<vmem>>) attributes {dimension_semantics = [#tpu.dimension_semantics<parallel>, #tpu.dimension_semantics<arbitrary>], iteration_bounds = array<i64: 2, 1>, scalar_prefetch = 0 : i64, scratch_operands = 0 : i64, tpu.core_type = #tpu.core_type<tc>, window_params = [{transform_indices = @transform_0, window_bounds = array<i64: 8, 128>}, {transform_indices = @transform_1, window_bounds = array<i64: 8, 128>}, {transform_indices = @transform_2, window_bounds = array<i64: 1, 1, 128>}, {transform_indices = @transform_3, window_bounds = array<i64: 1, 1, 128>}]} {
    %c0_i32 = arith.constant 0 : i32
    %0 = arith.cmpi eq, %arg1, %c0_i32 : i32
    %1 = arith.extui %0 : i1 to i32
    %c0_i32_0 = arith.constant 0 : i32
    %2 = arith.cmpi ne, %1, %c0_i32_0 : i32
    scf.if %2 {
      %cst_30 = arith.constant 0.000000e+00 : f32
      %64 = vector.broadcast %cst_30 : f32 to vector<1x1x128xf32>
      %c0_31 = arith.constant 0 : index
      %c0_32 = arith.constant 0 : index
      %c0_33 = arith.constant 0 : index
      %65 = vector.load %arg4[%c0_31, %c0_32, %c0_33] : memref<1x1x128xf32, #tpu.memory_space<vmem>>, vector<1x1x128xf32>
      tpu.vector_store %arg4[%c0_31, %c0_32, %c0_33], %64 {strides = array<i32>} : memref<1x1x128xf32, #tpu.memory_space<vmem>>, vector<1x1x128xf32>,
      %cst_34 = arith.constant 0.000000e+00 : f32
      %66 = vector.broadcast %cst_34 : f32 to vector<1x1x128xf32>
      %c0_35 = arith.constant 0 : index
      %c0_36 = arith.constant 0 : index
      %c0_37 = arith.constant 0 : index
      %67 = vector.load %arg5[%c0_35, %c0_36, %c0_37] : memref<1x1x128xf32, #tpu.memory_space<vmem>>, vector<1x1x128xf32>
      tpu.vector_store %arg5[%c0_35, %c0_36, %c0_37], %66 {strides = array<i32>} : memref<1x1x128xf32, #tpu.memory_space<vmem>>, vector<1x1x128xf32>,
    } else {
    }
    %c0 = arith.constant 0 : index
    %c0_1 = arith.constant 0 : index
    %3 = vector.load %arg2[%c0, %c0_1] : memref<8x128xf32, #tpu.memory_space<vmem>>, vector<8x128xf32>
    %c0_2 = arith.constant 0 : index
    %c0_3 = arith.constant 0 : index
    %4 = vector.load %arg3[%c0_2, %c0_3] : memref<8x128xf32, #tpu.memory_space<vmem>>, vector<8x128xf32>
    %5 = math.log %3 : vector<8x128xf32>
    %cst = arith.constant -1.000000e+02 : f32
    %6 = vector.broadcast %cst : f32 to vector<8x128xf32>
    %7 = arith.maximumf %5, %6 : vector<8x128xf32>
    %cst_4 = arith.constant 1.000000e+00 : f32
    %8 = vector.broadcast %cst_4 : f32 to vector<8x128xf32>
    %9 = arith.subf %8, %3 : vector<8x128xf32>
    %10 = math.log %9 : vector<8x128xf32>
    %cst_5 = arith.constant -1.000000e+02 : f32
    %11 = vector.broadcast %cst_5 : f32 to vector<8x128xf32>
    %12 = arith.maximumf %10, %11 : vector<8x128xf32>
    %13 = arith.mulf %4, %7 : vector<8x128xf32>
    %cst_6 = arith.constant 1.000000e+00 : f32
    %14 = vector.broadcast %cst_6 : f32 to vector<8x128xf32>
    %15 = arith.subf %14, %4 : vector<8x128xf32>
    %16 = arith.mulf %15, %12 : vector<8x128xf32>
    %17 = arith.addf %13, %16 : vector<8x128xf32>
    %cst_7 = arith.constant 0.000000e+00 : f32
    %18 = vector.broadcast %cst_7 : f32 to vector<8x128xf32>
    %19 = arith.subf %18, %17 : vector<8x128xf32>
    %20 = tpu.iota {dimensions = array<i32: 1>} : vector<8x128xi32>
    %21 = tpu.iota {dimensions = array<i32: 0>} : vector<128x128xi32>
    %22 = tpu.iota {dimensions = array<i32: 1>} : vector<128x128xi32>
    %c3_i32 = arith.constant 3 : i32
    %23 = vector.broadcast %c3_i32 : i32 to vector<8x128xi32>
    %24 = arith.andi %20, %23 : vector<8x128xi32>
    %c0_i32_8 = arith.constant 0 : i32
    %25 = vector.broadcast %c0_i32_8 : i32 to vector<8x128xi32>
    %26 = arith.cmpi eq, %24, %25 : vector<8x128xi32>
    %c2_i32 = arith.constant 2 : i32
    %27 = vector.broadcast %c2_i32 : i32 to vector<128x128xi32>
    %28 = arith.shrsi %21, %27 : vector<128x128xi32>
    %c2_i32_9 = arith.constant 2 : i32
    %29 = vector.broadcast %c2_i32_9 : i32 to vector<128x128xi32>
    %30 = arith.shrsi %22, %29 : vector<128x128xi32>
    %31 = arith.cmpi eq, %28, %30 : vector<128x128xi32>
    %cst_10 = arith.constant 0.000000e+00 : f32
    %32 = vector.broadcast %cst_10 : f32 to vector<8x128xf32>
    %33 = arith.cmpf ogt, %4, %32 : vector<8x128xf32>
    %34 = arith.extui %33 : vector<8x128xi1> to vector<8x128xi32>
    %35 = arith.sitofp %34 : vector<8x128xi32> to vector<8x128xf32>
    %cst_11 = arith.constant 0.000000e+00 : f32
    %36 = vector.broadcast %cst_11 : f32 to vector<8x128xf32>
    %37 = arith.select %26, %36, %35 : vector<8x128xi1>, vector<8x128xf32>
    %38 = arith.extui %31 : vector<128x128xi1> to vector<128x128xi32>
    %39 = arith.sitofp %38 : vector<128x128xi32> to vector<128x128xf32>
    %40 = arith.truncf %39 : vector<128x128xf32> to vector<128x128xbf16>
    %41 = arith.truncf %37 : vector<8x128xf32> to vector<8x128xbf16>
    %cst_12 = arith.constant dense<0.000000e+00> : vector<8x128xf32>
    %42 = tpu.matmul %41, %40, %cst_12 {dimension_numbers = #tpu.dot_dimension_numbers<[1], [0], [0], [1], [0, 0, 1, 1], [], []>} : vector<8x128xbf16>, vector<128x128xbf16>, vector<8x128xf32> -> vector<8x128xf32>
    %cst_13 = arith.constant 0.000000e+00 : f32
    %43 = vector.broadcast %cst_13 : f32 to vector<8x128xf32>
    %44 = arith.cmpf ogt, %42, %43 : vector<8x128xf32>
    %45 = arith.extui %44 : vector<8x128xi1> to vector<8x128xi32>
    %46 = arith.sitofp %45 : vector<8x128xi32> to vector<8x128xf32>
    %cst_14 = arith.constant 5.000000e+00 : f32
    %47 = vector.broadcast %cst_14 : f32 to vector<8x128xf32>
    %48 = arith.select %26, %47, %46 : vector<8x128xi1>, vector<8x128xf32>
    %49 = arith.mulf %48, %19 : vector<8x128xf32>
    %cst_15 = arith.constant dense<0.000000e+00> : vector<128xf32>
    %50 = vector.multi_reduction <add>, %49, %cst_15 [0] : vector<8x128xf32> to vector<128xf32>
    %51 = vector.shape_cast %50 : vector<128xf32> to vector<1x128xf32>
    %cst_16 = arith.constant 0.000000e+00 : f32
    %52 = vector.broadcast %cst_16 : f32 to vector<8x128xf32>
    %53 = arith.select %26, %19, %52 : vector<8x128xi1>, vector<8x128xf32>
    %cst_17 = arith.constant dense<0.000000e+00> : vector<128xf32>
    %54 = vector.multi_reduction <add>, %53, %cst_17 [0] : vector<8x128xf32> to vector<128xf32>
    %55 = vector.shape_cast %54 : vector<128xf32> to vector<1x128xf32>
    %c0_18 = arith.constant 0 : index
    %c0_19 = arith.constant 0 : index
    %c0_20 = arith.constant 0 : index
    %56 = vector.load %arg4[%c0_18, %c0_19, %c0_20] : memref<1x1x128xf32, #tpu.memory_space<vmem>>, vector<1x1x128xf32>
    %57 = vector.shape_cast %51 : vector<1x128xf32> to vector<1x1x128xf32>
    %58 = arith.addf %56, %57 : vector<1x1x128xf32>
    %c0_21 = arith.constant 0 : index
    %c0_22 = arith.constant 0 : index
    %c0_23 = arith.constant 0 : index
    %59 = vector.load %arg4[%c0_21, %c0_22, %c0_23] : memref<1x1x128xf32, #tpu.memory_space<vmem>>, vector<1x1x128xf32>
    tpu.vector_store %arg4[%c0_21, %c0_22, %c0_23], %58 {strides = array<i32>} : memref<1x1x128xf32, #tpu.memory_space<vmem>>, vector<1x1x128xf32>,
    %c0_24 = arith.constant 0 : index
    %c0_25 = arith.constant 0 : index
    %c0_26 = arith.constant 0 : index
    %60 = vector.load %arg5[%c0_24, %c0_25, %c0_26] : memref<1x1x128xf32, #tpu.memory_space<vmem>>, vector<1x1x128xf32>
    %61 = vector.shape_cast %55 : vector<1x128xf32> to vector<1x1x128xf32>
    %62 = arith.addf %60, %61 : vector<1x1x128xf32>
    %c0_27 = arith.constant 0 : index
    %c0_28 = arith.constant 0 : index
    %c0_29 = arith.constant 0 : index
    %63 = vector.load %arg5[%c0_27, %c0_28, %c0_29] : memref<1x1x128xf32, #tpu.memory_space<vmem>>, vector<1x1x128xf32>
    tpu.vector_store %arg5[%c0_27, %c0_28, %c0_29], %62 {strides = array<i32>} : memref<1x1x128xf32, #tpu.memory_space<vmem>>, vector<1x1x128xf32>,
    return
  }
  func.func @transform_0(%arg0: i32, %arg1: i32) -> (i32, i32) {
    %c1_i32 = arith.constant 1 : i32
    %0 = arith.muli %arg0, %c1_i32 : i32
    %1 = arith.addi %0, %arg1 : i32
    %c0_i32 = arith.constant 0 : i32
    %c0_i32_0 = arith.constant 0 : i32
    return %1, %c0_i32 : i32, i32
  }
  func.func @transform_1(%arg0: i32, %arg1: i32) -> (i32, i32) {
    %c1_i32 = arith.constant 1 : i32
    %0 = arith.muli %arg0, %c1_i32 : i32
    %1 = arith.addi %0, %arg1 : i32
    %c0_i32 = arith.constant 0 : i32
    %c0_i32_0 = arith.constant 0 : i32
    return %1, %c0_i32 : i32, i32
  }
  func.func @transform_2(%arg0: i32, %arg1: i32) -> (i32, i32, i32) {
    %c0_i32 = arith.constant 0 : i32
    %c0_i32_0 = arith.constant 0 : i32
    %c0_i32_1 = arith.constant 0 : i32
    return %arg0, %c0_i32, %c0_i32_0 : i32, i32, i32
  }
  func.func @transform_3(%arg0: i32, %arg1: i32) -> (i32, i32, i32) {
    %c0_i32 = arith.constant 0 : i32
    %c0_i32_0 = arith.constant 0 : i32
    %c0_i32_1 = arith.constant 0 : i32
    return %arg0, %c0_i32, %c0_i32_0 : i32, i32, i32
  }
}

</mosaic_0001>

<bundles_post_ra>
// kernel: tpu_custom_call.1
= control target key start
LH: loop header
LB: loop body
LE: loop exit
PB: predicated region body
PF: predicated region fallthrough
CT: control target
= control target key end

     0   :  { %9 = vsyncpa [#allocation3], 0  ;;  %s1280_s0 = inlined_call_operand.hbm [shape: f32[16,128], index: 0, kind: input, shape index: {}]   ;;  %s1281_s1 = inlined_call_operand.hbm [shape: f32[16,128], index: 1, kind: input, shape index: {}]   ;;  %s1282_s2 = inlined_call_operand.hbm [shape: f32[2,1,128], index: 2, kind: output, shape index: {0}]   ;;  %s1283_s3 = inlined_call_operand.hbm [shape: f32[2,1,128], index: 3, kind: output, shape index: {1}]  }
   0x1   :  { %11 = vsyncpa [#allocation3 + $0x1], 0 }
   0x2   :  { %12 = vsyncpa [#allocation6], 0 }
   0x3   :  { %14 = vsyncpa [#allocation6 + $0x1], 0 }
   0x4   :  { %15 = vsyncpa [#allocation4], 0 }
   0x5   :  { %17 = vsyncpa [#allocation4 + $0x1], 0 }
   0x6   :  { %18 = vsyncpa [#allocation9], 0 }
   0x7   :  { %20 = vsyncpa [#allocation9 + $0x1], 0  ;;  %s962_s12 = smov 0   ;;  %s964_s13 = smov 0  }
   0x8   :  { %s966_s14 = smov 0   ;;  %s968_s15 = smov 0  }
   0x9   :  { %s970_s16 = smov 0   ;;  %s972_s17 = smov 0  }
   0xa LB: > { %s593_s18 = sadd.s32 4294967295, %s933_s17   ;;  %s594_s19 = sadd.s32 4294967294, %s933_s17   ;;  %s933_s17 = sphi %s972_s17, %s26_s17   ;;  %s929_s16 = sphi %s970_s16, %s1309_s16   ;;  %s925_s15 = sphi %s968_s15, %s1308_s15   ;;  %s921_s14 = sphi %s966_s14, %s1307_s14   ;;  %s917_s13 = sphi %s964_s13, %s1306_s13   ;;  %s913_s12 = sphi %s962_s12, %s1305_s12  }
   0xb   : > { %s38_s20 = sadd.s32 1, %s929_s16  ;;  %s47_s21 = sadd.s32 1, %s921_s14 }
   0xc   : > { %p40_p0 = scmp.ge.s32.totalorder %s38_s20, 2  ;;  %p54_p1 = scmp.ne.s32.totalorder %s921_s14, %s917_s13 }
   0xd   : > { %p55_p2 = scmp.eq.s32.totalorder %s933_s17, 0  ;;  %p60_p3 = scmp.ne.s32.totalorder %s917_s13, %s913_s12 }
   0xe   : > { %s1311_s20 = smov (%p40_p0, %s38_s20), 0  ;;  %p61_p5 = scmp.eq.s32.totalorder %s593_s18, 0 }
   0xf   : > { %p1003_p4 = por %p55_p2, %p54_p1  ;;  %s44_s23 = ssub.s32 %s929_s16, %s1311_s20 }
  0x10   : > { %p112_p6 = scmp.eq.s32.totalorder %s593_s18, 1  ;;  %p45_p7 = scmp.eq.s32.totalorder %s44_s23, 0 }
  0x11   : > { %p1009_p8 = por %p61_p5, %p60_p3  ;;  %p118_p10 = scmp.eq.s32.totalorder %s594_s19, 1 }
  0x12   : > { %p1013_p9 = por %p112_p6, %p54_p1  ;;  %p698_p13 = scmp.lt.s32.totalorder %s933_s17, 2 }
  0x13   : > { %s1287_s24 = scalar_select %p1009_p8, 1, 0 }
  0x14   : > { %s1288_s25 = scalar_select %p1013_p9, 1, 0 }
  0x15   : > { %s1018_s26 = scalar_select %p45_p7, %s921_s14, %s47_s21  }
  0x16   : > { %p1020_p11 = por %p118_p10, %p60_p3  ;;  %s1027_s28 = sand.u32 1, %s921_s14  }
  0x17   : > { %s597_s29 = sshll.u32 %s1027_s28, 3  ;;  %s598_s30 = sshll.u32 %s929_s16, 7 }
  0x18   : > { %s1289_s27 = scalar_select %p1020_p11, 1, 0 }
  0x19   : > { %s1036_s6 = scalar_lea.hbm %s1280_s0, %s598_s30  ;;  %s168_s7 = scalar_lea.vmem [#allocation2], %s597_s29 }
  0x1a   : > { %s176_s8 = sshll.u32 %s168_s7, 4  ;;  %p1044_p0 = pnand %p698_p13, %p1003_p4  ;;  %s1040_s8 = int_to_ptr.vmem [resolvable:$true] %s176_s8 }
  0x1b   : > { %s165_s10 = scalar_lea.sflag [#allocation3], %s1027_s28  ;;  %s755_s11 = scalar_lea.hbm %s1036_s6, 128 }
  0x1c   : > { %p756_p3 = scmp.ne.s32.totalorder %s1036_s6, %s755_s11  ;;  %p757_p5 = pneg %p1044_p0 }
  0x1d   : > { %s760_s21 = scalar_lea.hbm %s1280_s0, 256  ;;  %p761_p4 = scmp.lt.u32.totalorder %s1036_s6, %s1280_s0 }
  0x1e   : > { %p758_p6 = pnand %p757_p5, %p756_p3  ;;  %p762_p10 = scmp.lt.u32.totalorder %s760_s21, %s755_s11 }
  0x1f   : > { %p764_p12 = scmp.lt.u32.totalorder %s755_s11, %s1036_s6 }
  0x20   : > { %p759_p7 = pneg %p758_p6  ;;  %p763_p13 = por %p762_p10, %p761_p4 }
  0x22   : > { %p765_p1 = por %p764_p12, %p763_p13 }
  0x24   : > { %p766_p2 = pnand %p765_p1, %p759_p7 }
  0x26   : > { %769 = shalt.err (!%p766_p2)
}
  0x27   : > { %s770_s4 = scalar_lea.vmem %s1040_s8, 128  ;;  %s935_s5 = smov [#allocation2]  }
  0x28   : > { %p771_p3 = scmp.ne.s32.totalorder %s1040_s8, %s770_s4  ;;  %s775_s7 = sshll.u32 %s935_s5, 4  ;;  %s776_s7 = int_to_ptr.vmem [resolvable:$false] %s775_s7 }
  0x29   : > { %s777_s18 = scalar_lea.vmem %s776_s7, 256  ;;  %p778_p9 = scmp.lt.s32.totalorder %s1040_s8, %s776_s7 }
  0x2a   : > { %p773_p6 = pnand %p771_p3, %p757_p5  ;;  %p779_p4 = scmp.lt.s32.totalorder %s777_s18, %s770_s4 }
  0x2c   : > { %p774_p11 = pneg %p773_p6  ;;  %p780_p10 = por %p779_p4, %p778_p9 }
  0x2e   : > { %p781_p12 = pnand %p780_p10, %p774_p11 }
  0x30   : > { %784 = shalt.err (!%p781_p12)
}
  0x31   : > { %687 = dma.hbm_to_vmem [thread:$0]  (!%p1044_p0), %s1036_s6, 128, %s1040_s8, %s165_s10  }
  0x32   : > { %p1291_p1 = scmp.lt.s32.totalorder %s933_s17, 3  ;;  %p1292_p2 = scmp.ge.s32.totalorder %s933_s17, 1 }
  0x33   : > { %s1089_s22 = scalar_lea.hbm %s1281_s1, %s598_s30  ;;  %s187_s23 = scalar_lea.vmem [#allocation5], %s597_s29 }
  0x34   : > { %p1080_p7 = pnand %p1292_p2, %p1291_p1  ;;  %s195_s4 = sshll.u32 %s187_s23, 4  ;;  %s196_s4 = int_to_ptr.vmem [resolvable:$true] %s195_s4 }
  0x35   : > { %s184_s6 = scalar_lea.sflag [#allocation6], %s1027_s28  ;;  %s785_s8 = scalar_lea.hbm %s1089_s22, 128 }
  0x36   : > { %s1293_s11 = scalar_select %p1080_p7, 1, 0 }
  0x37   : > { %p786_p9 = scmp.ne.s32.totalorder %s1089_s22, %s785_s8  ;;  %s790_s30 = scalar_lea.hbm %s1281_s1, 256 }
  0x38   : > { %p791_p3 = scmp.lt.u32.totalorder %s1089_s22, %s1281_s1  ;;  %p792_p6 = scmp.lt.u32.totalorder %s790_s30, %s785_s8 }
  0x39   : > { %p788_p11 = pnand %p786_p9, %p757_p5  ;;  %p794_p10 = scmp.lt.u32.totalorder %s785_s8, %s1089_s22 }
  0x3a   : > { %p793_p4 = por %p792_p6, %p791_p3 }
  0x3b   : > { %p789_p13 = pneg %p788_p11 }
  0x3c   : > { %p795_p12 = por %p794_p10, %p793_p4 }
  0x3e   : > { %p796_p1 = pnand %p795_p12, %p789_p13 }
  0x40   : > { %799 = shalt.err (!%p796_p1)
}
  0x41   : > { %s800_s28 = scalar_lea.vmem %s196_s4, 128  ;;  %s936_s29 = smov [#allocation5]  }
  0x42   : > { %p801_p2 = scmp.ne.s32.totalorder %s196_s4, %s800_s28  ;;  %s805_s19 = sshll.u32 %s936_s29, 4  ;;  %s806_s19 = int_to_ptr.vmem [resolvable:$false] %s805_s19 }
  0x43   : > { %s807_s21 = scalar_lea.vmem %s806_s19, 256  ;;  %p808_p8 = scmp.lt.s32.totalorder %s196_s4, %s806_s19 }
  0x44   : > { %p803_p9 = pnand %p801_p2, %p757_p5  ;;  %p809_p7 = scmp.lt.s32.totalorder %s807_s21, %s800_s28 }
  0x46   : > { %p804_p11 = pneg %p803_p9  ;;  %p810_p3 = por %p809_p7, %p808_p8 }
  0x48   : > { %p811_p6 = pnand %p810_p3, %p804_p11 }
  0x4a   : > { %814 = shalt.err (!%p811_p6)
}
  0x4b   : > { %690 = dma.hbm_to_vmem [thread:$0]  (!%p1044_p0), %s1089_s22, 128, %s196_s4, %s184_s6  }
  0x4c   : > { %p1294_p13 = scmp.ne.s32.totalorder %s1293_s11, 0 }
  0x4d   : > { %s1116_s23 = sand.u32 (!%p1294_p13), 1, %s917_s13   ;;  %p1295_p8 = scmp.ne.s32.totalorder (!%p1294_p13), %s1287_s24, 0 }
  0x4e   : > { %204 = sbr.rel (%p1294_p13) target bundleno = 372 (0x174), region = 28  ;;  %s602_s8 = sshll.u32 (!%p1294_p13), %s1116_s23, 3 }
  0x4f   : > { %s207_s10 = scalar_lea.sflag (!%p1294_p13), [#allocation3], %s1116_s23  ;;  %s1120_s5 = scalar_lea.vmem (!%p1294_p13), [#allocation2], %s602_s8 }
  0x55   : > { %896 = dma.done.wait (%p1295_p8), %s207_s10, 128  }
  0x56   : > { %898 = vsyncadd (%p1295_p8), %s207_s10, 4294967168  ;;  %s216_s9 = scalar_lea.sflag [#allocation6], %s1116_s23  ;;  %s1127_s11 = scalar_lea.vmem [#allocation5], %s602_s8  ;;  %v273_v0 = vlaneseq }
  0x57   : > { %900 = dma.done.wait (%p1295_p8), %s216_s9, 128  }
  0x58   : > { %902 = vsyncadd (%p1295_p8), %s216_s9, 4294967168  ;;  %v937_v1 = vmov 0.0   ;;  %vm938_vm0 = vmmov 0   ;;  %v1135_v2 = vand.u32 127, %v273_v0  ;;  %v276_v3 = vshrl.u32 %v273_v0, 7  ;;  %v260_v39 = vld [vmem:[%s1127_s11] sm:$0xff] }
  0x59   : > { %656 = vmatprep.subr.bf16.mxu0 %v937_v1  ;;  %672 = vmatprep.mubr.msk.bf16.mxu0 %vm938_vm0, %v937_v1  ;;  %v939_v19 = vmov 1.0|1.0   ;;  %v259_v44 = vld [vmem:[%s1120_s5] sm:$0xff]  ;;  %v269_v52 = vsub.f32 1.0, %v260_v39  ;;  %s1188_s24 = scalar_lea.vmem [#allocation7], %s1116_s23  ;;  %s249_s22 = scalar_lea.vmem [#allocation8], %s1116_s23 }
  0x5a   : > { %v277_v4 = vadd.s32 8, %v276_v3  ;;  %v294_v5 = vshra.s32 %v276_v3, 2  ;;  %v1138_v6 = vshra.s32 %v1135_v2, 2  ;;  %v278_v7 = vadd.s32 16, %v276_v3  ;;  %257 = vst [vmem:[%s1188_s24] sm:$0x1] %v937_v1  ;;  %258 = vst [vmem:[%s249_s22] sm:$0x1] %v937_v1 }
  0x5b   : > { %v279_v8 = vadd.s32 24, %v276_v3  ;;  %v280_v9 = vadd.s32 32, %v276_v3  ;;  %v281_v10 = vadd.s32 40, %v276_v3  ;;  %v282_v14 = vadd.s32 48, %v276_v3  ;;  %s643_s4 = sshll.u32 %s925_s15, 4  ;;  %s466_s18 = sshll.u32 %s249_s22, 4  ;;  %s467_s18 = int_to_ptr.vmem [resolvable:$true] %s466_s18 }
  0x5c   : > { %v295_v11 = vshra.s32 %v277_v4, 2  ;;  %vm311_vm1 = vcmp.eq.s32.totalorder %v294_v5, %v1138_v6  ;;  %v296_v12 = vshra.s32 %v278_v7, 2  ;;  %v283_v15 = vadd.s32 56, %v276_v3  ;;  %s1200_s7 = scalar_lea.hbm %s1283_s3, %s643_s4  ;;  %s441_s28 = scalar_lea.sflag [#allocation9], %s1116_s23 }
  0x5d   : > { %v297_v13 = vshra.s32 %v279_v8, 2  ;;  %v298_v17 = vshra.s32 %v280_v9, 2  ;;  %v299_v18 = vshra.s32 %v281_v10, 2  ;;  %v300_v20 = vshra.s32 %v282_v14, 2  ;;  %s815_s29 = scalar_lea.vmem %s467_s18, 16  ;;  %p1302_p5 = scmp.ne.s32.totalorder %s1288_s25, 0 }
  0x5e   : > { %vm312_vm2 = vcmp.eq.s32.totalorder %v295_v11, %v1138_v6  ;;  %vm1143_vm3 = vcmp.eq.s32.totalorder %v296_v12, %v1138_v6  ;;  %v301_v21 = vshra.s32 %v283_v15, 2  ;;  %v284_v22 = vadd.s32 64, %v276_v3  ;;  %p816_p0 = scmp.ne.s32.totalorder %s467_s18, %s815_s29  ;;  %s940_s19 = smov [#allocation8]  }
  0x5f   : > { %vm621_vm4 = vmpackc.low %vm312_vm2, %vm311_vm1  ;;  %vm314_vm5 = vcmp.eq.s32.totalorder %v297_v13, %v1138_v6  ;;  %vm315_vm7 = vcmp.eq.s32.totalorder %v298_v17, %v1138_v6  ;;  %vm316_vm8 = vcmp.eq.s32.totalorder %v299_v18, %v1138_v6  ;;  %v285_v23 = vadd.s32 72, %v276_v3  ;;  %s819_s21 = sshll.u32 %s940_s19, 4  ;;  %s820_s21 = int_to_ptr.vmem [resolvable:$false] %s819_s21 }
  0x60   : > { %657 = vmatpush3.bf16.msk.msra.mxu0 %vm621_vm4, %v939_v19  ;;  %vm623_vm6 = vmpackc.low %vm314_vm5, %vm1143_vm3  ;;  %vm1155_vm10 = vcmp.eq.s32.totalorder %v300_v20, %v1138_v6  ;;  %vm318_vm11 = vcmp.eq.s32.totalorder %v301_v21, %v1138_v6  ;;  %v302_v25 = vshra.s32 %v284_v22, 2  ;;  %v286_v27 = vadd.s32 80, %v276_v3  ;;  %p817_p7 = pnand %p816_p0, %p1302_p5  ;;  %s821_s8 = scalar_lea.vmem %s820_s21, 32 }
  0x61   : > { %658 = vmatprep.subr.bf16.mxu0 %v937_v1  ;;  %vm625_vm9 = vmpackc.low %vm316_vm8, %vm315_vm7  ;;  %v303_v26 = vshra.s32 %v285_v23, 2  ;;  %v287_v28 = vadd.s32 88, %v276_v3  ;;  %v288_v29 = vadd.s32 96, %v276_v3  ;;  %v289_v30 = vadd.s32 104, %v276_v3  ;;  %v433_v0 = vld [vmem:[%s249_s22] sm:$0x1]  ;;  %p822_p10 = scmp.lt.s32.totalorder %s467_s18, %s820_s21  ;;  %p823_p12 = scmp.lt.s32.totalorder %s821_s8, %s815_s29 }
  0x62   : > { %vm627_vm12 = vmpackc.low %vm318_vm11, %vm1155_vm10  ;;  %vm319_vm13 = vcmp.eq.s32.totalorder %v302_v25, %v1138_v6  ;;  %v304_v31 = vshra.s32 %v286_v27, 2  ;;  %v290_v33 = vadd.s32 112, %v276_v3  ;;  %v291_v34 = vadd.s32 120, %v276_v3  ;;  %p818_p4 = pneg %p817_p7 }
  0x63   : > { %vm320_vm14 = vcmp.eq.s32.totalorder %v303_v26, %v1138_v6  ;;  %v305_v32 = vshra.s32 %v287_v28, 2  ;;  %v306_v35 = vshra.s32 %v288_v29, 2  ;;  %v307_v36 = vshra.s32 %v289_v30, 2  ;;  %p824_p1 = por %p823_p12, %p822_p10 }
  0x64   : > { %659 = vmatpush3.bf16.msk.msra.mxu0 %vm623_vm6, %v939_v19  ;;  %vm629_vm15 = vmpackc.low %vm320_vm14, %vm319_vm13  ;;  %vm321_vm0 = vcmp.eq.s32.totalorder %v304_v31, %v1138_v6  ;;  %v308_v37 = vshra.s32 %v290_v33, 2  ;;  %v309_v38 = vshra.s32 %v291_v34, 2  ;;  %v292_v40 = vand.u32 3, %v1135_v2 }
  0x65   : > { %660 = vmatprep.subr.bf16.mxu0 %v937_v1  ;;  %vm322_vm1 = vcmp.eq.s32.totalorder %v305_v32, %v1138_v6  ;;  %vm323_vm3 = vcmp.eq.s32.totalorder %v306_v35, %v1138_v6  ;;  %vm324_vm4 = vcmp.eq.s32.totalorder %v307_v36, %v1138_v6  ;;  %vm327_vm8 = vcmp.gt.f32.partialorder %v260_v39, 0.0  ;;  %p825_p2 = pnand %p824_p1, %p818_p4 }
  0x66   : > { %vm631_vm2 = vmpackc.low %vm322_vm1, %vm321_vm0  ;;  %vm325_vm6 = vcmp.eq.s32.totalorder %v308_v37, %v1138_v6  ;;  %vm326_vm7 = vcmp.eq.s32.totalorder %v309_v38, %v1138_v6  ;;  %v604_v42 = vsel %vm327_vm8, 1.0, %v937_v1  ;;  %v264_v45 = vsub.f32 1.0, %v259_v44 }
  0x67   : > { %vm633_vm5 = vmpackc.low %vm324_vm4, %vm323_vm3  ;;  %v640_v43 = vpack.c.bf16 %v604_v42, %v604_v42  ;;  %751 = vlog2.f32 %v259_v44 }
  0x68   : > { %661 = vmatpush3.bf16.msk.msra.mxu0 %vm625_vm9, %v939_v19  ;;  %vm1176_vm9 = vcmp.eq.s32.totalorder %v292_v40, 0  ;;  %vm635_vm10 = vmpackc.low %vm326_vm7, %vm325_vm6  ;;  %753 = vlog2.f32 %v264_v45 }
  0x69   : > { %662 = vmatprep.subr.bf16.mxu0 %v937_v1  ;;  %vm637_vm11 = vmneg %vm1176_vm9 }
  0x6c   : > { %663 = vmatpush3.bf16.msk.msra.mxu0 %vm627_vm12, %v939_v19  ;;  %vm639_vm12 = vmpackc.low %vm637_vm11, %vm637_vm11 }
  0x6d   : > { %664 = vmatprep.subr.bf16.mxu0 %v937_v1 }
  0x70   : > { %665 = vmatpush3.bf16.msk.msra.mxu0 %vm629_vm15, %v939_v19 }
  0x71   : > { %666 = vmatprep.subr.bf16.mxu0 %v937_v1  ;;  %v752_v46 = vpop.eup %751 }
  0x72   : > { %v754_v47 = vpop.eup %753  ;;  %v262_v48 = vmul.f32 0.6931472, %v752_v46 }
  0x73   : > { %v266_v49 = vmul.f32 0.6931472, %v754_v47 }
  0x74   : > { %667 = vmatpush3.bf16.msk.msra.mxu0 %vm631_vm2, %v939_v19  ;;  %v263_v50 = vmax.f32 %v262_v48, -100.0 }
  0x75   : > { %668 = vmatprep.subr.bf16.mxu0 %v937_v1  ;;  %v267_v51 = vmax.f32 %v266_v49, -100.0 }
  0x76   : > { %v268_v53 = vmul.f32 %v263_v50, %v260_v39 }
  0x77   : > { %v270_v54 = vmul.f32 %v269_v52, %v267_v51 }
  0x78   : > { %669 = vmatpush3.bf16.msk.msra.mxu0 %vm633_vm5, %v939_v19 }
  0x79   : > { %670 = vmatprep.subr.bf16.mxu0 %v937_v1  ;;  %v271_v55 = vadd.f32 %v270_v54, %v268_v53 }
  0x7b   : > { %v272_v56 = vsub.f32 0.0, %v271_v55 }
  0x7c   : > { %671 = vmatpush3.bf16.msk.msra.mxu0 %vm635_vm10, %v939_v19 }
  0x7d   : > { %v423_v57 = vsel %vm1176_vm9, %v272_v56, 0.0 }
  0x7e   : > { %v424_v58 = vrot.slane %v423_v57, 4 }
  0x7f   : > { %673 = vmatmul.mubr.msk.bf16.vlgmr.msra.gmra.mrb[0].mxu0 %vm639_vm12, %v640_v43 }
  0x80   : > { %v425_v59 = vadd.f32 %v424_v58, %v423_v57 }
  0x82   : > { %v426_v60 = vrot.slane %v425_v59, 2 }
  0x84   : > { %v427_v61 = vadd.f32 %v426_v60, %v425_v59 }
  0x86   : > { %v428_v62 = vrot.slane %v427_v61, 1 }
  0x88   : > { %v429_v63 = vadd.f32 %v428_v62, %v427_v61 }
  0x8a   : > { %v434_v2 = vadd.f32 %v433_v0, %v429_v63 }
  0x8c   : > { %435 = vst [vmem:[%s249_s22] sm:$0x1] %v434_v2 }
  0x8d   : > { %828 = shalt.err (!%p825_p2)
}
  0x8e   : > { %s829_s10 = scalar_lea.hbm %s1200_s7, 16  ;;  %s833_s11 = scalar_lea.hbm %s1283_s3, 32 }
  0x8f   : > { %p830_p9 = scmp.ne.s32.totalorder %s1200_s7, %s829_s10  ;;  %p834_p6 = scmp.lt.u32.totalorder %s1200_s7, %s1283_s3 }
  0x90   : > { %p835_p13 = scmp.lt.u32.totalorder %s833_s11, %s829_s10  ;;  %p837_p0 = scmp.lt.u32.totalorder %s829_s10, %s1200_s7 }
  0x91   : > { %p831_p11 = pnand %p830_p9, %p1302_p5 }
  0x92   : > { %p836_p8 = por %p835_p13, %p834_p6 }
  0x93   : > { %p832_p3 = pneg %p831_p11 }
  0x94   : > { %p838_p7 = por %p837_p0, %p836_p8 }
  0x96   : > { %p839_p4 = pnand %p838_p7, %p832_p3 }
  0x98   : > { %842 = shalt.err (!%p839_p4)
}
  0x99   : > { %681 = dma.vmem_to_hbm [thread:$0]  (%p1302_p5), %s467_s18, 16, %s1200_s7, %s441_s28   ;;  %v430_v15 = vld [vmem:[%s1188_s24] sm:$0x1] }
  0x9a   : > { %s453_s30 = sshll.u32 %s1188_s24, 4  ;;  %s1230_s28 = scalar_lea.hbm %s1282_s2, %s643_s4  ;;  %s1232_s30 = int_to_ptr.vmem [resolvable:$true] %s453_s30 }
  0x9b   : > { %s437_s29 = scalar_lea.sflag [#allocation4], %s1116_s23  ;;  %s843_s19 = scalar_lea.vmem %s1232_s30, 16 }
  0x9c   : > { %p844_p10 = scmp.ne.s32.totalorder %s1232_s30, %s843_s19  ;;  %s941_s21 = smov [#allocation7]  }
  0x9d   : > { %s847_s8 = sshll.u32 %s941_s21, 4  ;;  %s848_s8 = int_to_ptr.vmem [resolvable:$false] %s847_s8 }
  0x9e   : > { %p845_p12 = pnand %p844_p10, %p1302_p5  ;;  %s849_s15 = scalar_lea.vmem %s848_s8, 32 }
  0x9f   : > { %p850_p2 = scmp.lt.s32.totalorder %s1232_s30, %s848_s8  ;;  %p851_p9 = scmp.lt.s32.totalorder %s849_s15, %s843_s19 }
  0xa0   : > { %p846_p1 = pneg %p845_p12 }
  0xa1   : > { %p852_p11 = por %p851_p9, %p850_p2 }
  0xa3   : > { %p853_p3 = pnand %p852_p11, %p846_p1 }
 0x152   : > { %v406_v3 = vpop.f32.mrb[0].mxu0 }
 0x153   : > { %vm412_vm13 = vcmp.gt.f32.partialorder %v406_v3, 0.0  ;;  %v674_v4 = vpop.f32.mrb[1].mxu0 }
 0x154   : > { %v642_v5 = vsel %vm412_vm13, 1.0, %v937_v1  ;;  %v409_v6 = vpop.f32.mrb[2].mxu0 }
 0x155   : > { %v415_v7 = vsel %vm1176_vm9, 5.0, %v642_v5  ;;  %v675_v8 = vpop.f32.mrb[3].mxu0 }
 0x156   : > { %v416_v9 = vmul.f32 %v415_v7, %v272_v56 }
 0x158   : > { %v417_v10 = vrot.slane %v416_v9, 4 }
 0x15a   : > { %v418_v11 = vadd.f32 %v417_v10, %v416_v9 }
 0x15c   : > { %v419_v12 = vrot.slane %v418_v11, 2 }
 0x15e   : > { %v420_v13 = vadd.f32 %v419_v12, %v418_v11 }
 0x160   : > { %v421_v14 = vrot.slane %v420_v13, 1 }
 0x162   : > { %v422_v16 = vadd.f32 %v421_v14, %v420_v13 }
 0x164   : > { %v431_v17 = vadd.f32 %v430_v15, %v422_v16 }
 0x166   : > { %432 = vst [vmem:[%s1188_s24] sm:$0x1] %v431_v17 }
 0x167   : > { %856 = shalt.err (!%p853_p3)
}
 0x168   : > { %s857_s23 = scalar_lea.hbm %s1230_s28, 16  ;;  %s861_s10 = scalar_lea.hbm %s1282_s2, 32 }
 0x169   : > { %p858_p6 = scmp.ne.s32.totalorder %s1230_s28, %s857_s23  ;;  %p862_p0 = scmp.lt.u32.totalorder %s1230_s28, %s1282_s2 }
 0x16a   : > { %p863_p7 = scmp.lt.u32.totalorder %s861_s10, %s857_s23  ;;  %p865_p10 = scmp.lt.u32.totalorder %s857_s23, %s1230_s28 }
 0x16b   : > { %p859_p13 = pnand %p858_p6, %p1302_p5 }
 0x16c   : > { %p864_p4 = por %p863_p7, %p862_p0 }
 0x16d   : > { %p860_p8 = pneg %p859_p13 }
 0x16e   : > { %p866_p12 = por %p865_p10, %p864_p4 }
 0x170   : > { %p867_p1 = pnand %p866_p12, %p860_p8 }
 0x172   : > { %870 = shalt.err (!%p867_p1)
}
 0x173   : > { %680 = dma.vmem_to_hbm [thread:$0]  (%p1302_p5), %s1232_s30, 16, %s1230_s28, %s437_s29  }
 0x174 PF: > { %s478_s11 = sand.u32 1, %s913_s12   ;;  %p1303_p2 = scmp.ne.s32.totalorder %s1289_s27, 0 }
 0x175   : > { %p1304_p9 = scmp.ge.s32.totalorder %s933_s17, 2  ;;  %s479_s22 = scalar_lea.sflag [#allocation4], %s478_s11 }
 0x177   : > { %p692_p11 = pnand %p1304_p9, %p1303_p2 }
 0x179   : > { %904 = dma.done.wait (!%p692_p11), %s479_s22, 16  }
 0x17a   : > { %906 = vsyncadd (!%p692_p11), %s479_s22, 4294967280  ;;  %s487_s6 = scalar_lea.sflag [#allocation9], %s478_s11 }
 0x17b   : > { %908 = dma.done.wait (!%p692_p11), %s487_s6, 16  }
 0x17c   : > { %910 = vsyncadd (!%p692_p11), %s487_s6, 4294967280  ;;  %s26_s17 = sadd.s32 1, %s933_s17   ;;  %s1305_s12 = smov %s917_s13 }
 0x17d   : > { %p23_p3 = scmp.ge.s32.totalorder %s26_s17, 4   ;;  %s1306_s13 = smov %s921_s14 }
 0x17e   : > { %s1307_s14 = smov %s1018_s26  ;;  %s1308_s15 = smov %s929_s16 }
 0x17f   : > { %s1309_s16 = smov %s1311_s20  ;;  %25 = sbr.rel (!%p23_p3) target bundleno = 10 (0xa), region = 107 }
 0x186   :  { %491 = vsyncpa [#allocation3], 1 }
 0x187   :  { %493 = vsyncpa [#allocation3 + $0x1], 1 }
 0x188   :  { %494 = vsyncpa [#allocation6], 1 }
 0x189   :  { %496 = vsyncpa [#allocation6 + $0x1], 1 }
 0x18a   :  { %497 = vsyncpa [#allocation4], 1 }
 0x18b   :  { %499 = vsyncpa [#allocation4 + $0x1], 1 }
 0x18c   :  { %500 = vsyncpa [#allocation9], 1 }
 0x18d   :  { %502 = vsyncpa [#allocation9 + $0x1], 1 }

</bundles_post_ra>
